<compile_context>
chip_gen: v5e
topology: v5e:2x2
jax: 0.10.0
libtpu: 0.0.40
codegen_flags: <defaults>
</compile_context>

<pallas_src>
import jax
import jax.numpy as jnp
from jax.experimental import pallas as pl
from jax.experimental.pallas import tpu as pltpu


def _affine_kernel(scale_ref, shift_ref, x_ref, o_ref):
    """out = x * scale + shift, scale/shift broadcast along the lane axis.

    scale_ref/shift_ref : (TR, 1)   f32 per-row scalars (sublane axis)
    x_ref/o_ref         : (TR, THW) activation tile (lanes = spatial)

    Compute happens in f32 (jnp promotion with the f32 scale/shift); the cast
    to the output dtype happens only at the store.
    """
    o_ref[...] = (x_ref[...] * scale_ref[...] + shift_ref[...]).astype(o_ref.dtype)


def _select_tiles(rows: int, hw: int, itemsize: int):
    """Byte-budgeted tiles: full-HW-contiguous lanes first, rows from the rest."""
    sub_unit = {1: 32, 2: 16}.get(itemsize, 8)   # dtype-aware sublane unit
    LANE = 128
    BUDGET = 4 << 20                             # ~4 MiB per block

    # --- lane (spatial) tile: prefer full HW so each block DMA is contiguous ---
    if hw * sub_unit * itemsize <= BUDGET:
        thw = hw
    else:
        cap = max((BUDGET // (sub_unit * itemsize)) // LANE * LANE, LANE)
        thw = None
        t = min(cap, (hw // LANE) * LANE)
        while t >= LANE:
            if hw % t == 0:          # divides HW -> no masked edge stores
                thw = t
                break
            t -= LANE
        if thw is None:              # HW not a multiple of 128: accept masked edge
            thw = min(cap, hw)

    # --- row (sublane) tile from the remaining byte budget ---
    tr = max((BUDGET // (thw * itemsize)) // sub_unit * sub_unit, sub_unit)
    if tr >= rows:
        tr = rows

    # Megacore (v7x): keep >= 2 row tiles when the row dim allows it so the
    # HBM-bound stream shards across both TensorCores.
    if -(-rows // tr) < 2 and rows >= 2 * sub_unit:
        half = -(-rows // 2)
        tr = -(-half // sub_unit) * sub_unit

    return tr, thw


def apply_time_embedding(inputs, time_emb, weight, bias, *, donate_inputs=False):
    """inputs: (B, C, H, W); time_emb: (B, T);
    weight: (2C, T), bias: (2C,) -- PyTorch nn.Linear(time_emblen, 2*chan)."""
    B, C, H, W = inputs.shape
    HW = H * W
    rows = B * C
    itemsize = jnp.dtype(inputs.dtype).itemsize

    # --- hoisted tiny SiLU + Linear (plain XLA, off the kernel critical path) ---
    silu = time_emb * jax.nn.sigmoid(time_emb)
    tms = (silu @ weight.T + bias).astype(jnp.float32)   # (B, 2C), keep f32
    shift = tms[:, :C].reshape(rows, 1)                  # mean        (B*C, 1) f32
    scale = (tms[:, C:] + 1.0).reshape(rows, 1)          # std + 1     (B*C, 1) f32

    # Lane-dense 2D view: rows (= B*C) on sublanes, spatial on lanes.
    x = inputs.reshape(rows, HW)

    TR, THW = _select_tiles(rows, HW, itemsize)
    grid = (pl.cdiv(rows, TR), pl.cdiv(HW, THW))

    # Double-buffered footprint: 2x in + 2x out blocks (+ tiny scale/shift).
    block_bytes = TR * THW * itemsize
    resident = 4 * block_bytes + 4 * TR * 4 * 2
    vmem_limit = min(resident + (8 << 20), 48 << 20)

    out = pl.pallas_call(
        _affine_kernel,
        out_shape=jax.ShapeDtypeStruct((rows, HW), inputs.dtype),
        grid_spec=pltpu.PrefetchScalarGridSpec(
            num_scalar_prefetch=0,
            grid=grid,
            in_specs=[
                pl.BlockSpec((TR, 1), lambda i, j: (i, 0)),      # scale (f32)
                pl.BlockSpec((TR, 1), lambda i, j: (i, 0)),      # shift (f32)
                pl.BlockSpec((TR, THW), lambda i, j: (i, j)),    # x
            ],
            out_specs=pl.BlockSpec((TR, THW), lambda i, j: (i, j)),
        ),
        compiler_params=pltpu.CompilerParams(
            dimension_semantics=("parallel", "parallel"),
            vmem_limit_bytes=vmem_limit),
        input_output_aliases=({2: 0} if donate_inputs else {}),
    )(scale, shift, x)

    return out.reshape(B, C, H, W)


def _reference(inputs, time_emb, weight, bias):
    """Pure-JAX replica of the PyTorch forward, for verification."""
    silu = time_emb * jax.nn.sigmoid(time_emb)
    tms = silu @ weight.T + bias                    # (B, 2C)
    C = inputs.shape[1]
    mean = tms[:, :C][:, :, None, None]
    std = tms[:, C:][:, :, None, None]
    return inputs * (std + 1.0) + mean


if __name__ == "__main__":
    B, chan, H, W = 2, 4, 16, 16
    time_emblen = 32

    key = jax.random.PRNGKey(0)
    k_x, k_t, k_w, k_b = jax.random.split(key, 4)

    inputs = jax.random.normal(k_x, (B, chan, H, W), dtype=jnp.float32)
    time_emb = jax.random.normal(k_t, (B, time_emblen), dtype=jnp.float32)

    # Deterministic init matching nn.Linear(time_emblen, 2*chan) default:
    # U(-1/sqrt(fan_in), 1/sqrt(fan_in)).
    bound = 1.0 / (time_emblen ** 0.5)
    weight = jax.random.uniform(k_w, (2 * chan, time_emblen),
                                minval=-bound, maxval=bound, dtype=jnp.float32)
    bias = jax.random.uniform(k_b, (2 * chan,),
                              minval=-bound, maxval=bound, dtype=jnp.float32)

    out = apply_time_embedding(inputs, time_emb, weight, bias)
    out = jax.block_until_ready(out)

    ref = _reference(inputs, time_emb, weight, bias)
    assert out.shape == (B, chan, H, W)
    assert jnp.allclose(out, ref, atol=1e-5, rtol=1e-5), "mismatch vs reference"

    print("KERNEL_OK")
</pallas_src>

<mosaic_0001>
module attributes {stable_mosaic.version = 11 : i64} {
  func.func @_affine_kernel(%arg0: i32, %arg1: i32, %arg2: memref<8x1xf32, #tpu.memory_space<vmem>>, %arg3: memref<8x1xf32, #tpu.memory_space<vmem>>, %arg4: memref<8x256xf32, #tpu.memory_space<vmem>>, %arg5: memref<8x256xf32, #tpu.memory_space<vmem>>) attributes {dimension_semantics = [#tpu.dimension_semantics<parallel>, #tpu.dimension_semantics<parallel>], iteration_bounds = array<i64: 1, 1>, scalar_prefetch = 0 : i64, scratch_operands = 0 : i64, tpu.core_type = #tpu.core_type<tc>, window_params = [{transform_indices = @transform_0, window_bounds = array<i64: 8, 1>}, {transform_indices = @transform_1, window_bounds = array<i64: 8, 1>}, {transform_indices = @transform_2, window_bounds = array<i64: 8, 256>}, {transform_indices = @transform_3, window_bounds = array<i64: 8, 256>}]} {
    %c0 = arith.constant 0 : index
    %c0_0 = arith.constant 0 : index
    %0 = vector.load %arg4[%c0, %c0_0] : memref<8x256xf32, #tpu.memory_space<vmem>>, vector<8x256xf32>
    %c0_1 = arith.constant 0 : index
    %c0_2 = arith.constant 0 : index
    %1 = vector.load %arg2[%c0_1, %c0_2] : memref<8x1xf32, #tpu.memory_space<vmem>>, vector<8x1xf32>
    %2 = vector.broadcast %1 : vector<8x1xf32> to vector<8x256xf32>
    %3 = arith.mulf %0, %2 : vector<8x256xf32>
    %c0_3 = arith.constant 0 : index
    %c0_4 = arith.constant 0 : index
    %4 = vector.load %arg3[%c0_3, %c0_4] : memref<8x1xf32, #tpu.memory_space<vmem>>, vector<8x1xf32>
    %5 = vector.broadcast %4 : vector<8x1xf32> to vector<8x256xf32>
    %6 = arith.addf %3, %5 : vector<8x256xf32>
    %c0_5 = arith.constant 0 : index
    %c0_6 = arith.constant 0 : index
    %7 = vector.load %arg5[%c0_5, %c0_6] : memref<8x256xf32, #tpu.memory_space<vmem>>, vector<8x256xf32>
    tpu.vector_store %arg5[%c0_5, %c0_6], %6 {strides = array<i32>} : memref<8x256xf32, #tpu.memory_space<vmem>>, vector<8x256xf32>,
    return
  }
  func.func @transform_0(%arg0: i32, %arg1: i32) -> (i32, i32) {
    %c0_i32 = arith.constant 0 : i32
    %c0_i32_0 = arith.constant 0 : i32
    return %arg0, %c0_i32 : i32, i32
  }
  func.func @transform_1(%arg0: i32, %arg1: i32) -> (i32, i32) {
    %c0_i32 = arith.constant 0 : i32
    %c0_i32_0 = arith.constant 0 : i32
    return %arg0, %c0_i32 : i32, i32
  }
  func.func @transform_2(%arg0: i32, %arg1: i32) -> (i32, i32) {
    %c0_i32 = arith.constant 0 : i32
    return %arg0, %arg1 : i32, i32
  }
  func.func @transform_3(%arg0: i32, %arg1: i32) -> (i32, i32) {
    %c0_i32 = arith.constant 0 : i32
    return %arg0, %arg1 : i32, i32
  }
}

</mosaic_0001>

<bundles_post_ra>
// kernel: tpu_custom_call.1
= control target key start
LH: loop header
LB: loop body
LE: loop exit
PB: predicated region body
PF: predicated region fallthrough
CT: control target
= control target key end

     0   :  { %s117_s0 = inlined_call_operand.vmem [shape: f32[8,1], index: 0, kind: input, shape index: {}]   ;;  %s118_s1 = inlined_call_operand.vmem [shape: f32[8,1], index: 1, kind: input, shape index: {}]   ;;  %s119_s2 = inlined_call_operand.vmem [shape: f32[8,256], index: 2, kind: input, shape index: {}]   ;;  %s120_s3 = inlined_call_operand.hbm [shape: f32[8,256], index: 3, kind: output, shape index: {}]  }
   0x1   :  { %v17_v0 = vld [vmem:[%s117_s0] sm:$0xff] }
   0x2   :  { %8 = vsyncpa [#allocation3], 0  ;;  %v80_v1 = vmov 0   ;;  %v25_v2 = vld [vmem:[%s118_s1] sm:$0xff]  ;;  %v16_v5 = vld [vmem:[%s119_s2 + $0x8] sm:$0xff]  ;;  %s81_s0 = smov [#allocation2]  }
   0x3   :  { %53 = vset.pattern.permute.xlu0 %v80_v1  ;;  %v15_v4 = vld [vmem:[%s119_s2] sm:$0xff]  ;;  %s40_s20 = sshll.u32 %s81_s0, 4  ;;  %s42_s23 = sshll.u32 %s120_s3, 4  ;;  %s41_s20 = int_to_ptr.vmem [resolvable:$true] %s40_s20  ;;  %s43_s23 = int_to_ptr.hbm [resolvable:$true] %s42_s23 }
   0x4   :  { %20 = vperm.xlu0 %53, %v17_v0  }
   0xc   :  { %28 = vperm.xlu0 %53, %v25_v2  }
  0x76   :  { %v21_v3 = vpop.permute.xlu0 %20 }
  0x77   :  { %v23_v6 = vmul.f32 %v21_v3, %v15_v4  ;;  %v24_v7 = vmul.f32 %v21_v3, %v16_v5 }
  0x7e   :  { %v29_v8 = vpop.permute.xlu0 %28 }
  0x7f   :  { %v31_v9 = vadd.f32 %v29_v8, %v23_v6  ;;  %v32_v10 = vadd.f32 %v29_v8, %v24_v7 }
  0x81   :  { %33 = vst [vmem:[#allocation2] sm:$0xff] %v31_v9 }
  0x82   :  { %34 = vst [vmem:[#allocation2 + $0x8] sm:$0xff] %v32_v10 }
  0x83   :  { %45 = dma.vmem_to_hbm [thread:$0]  %s41_s20, 256, %s43_s23, [#allocation3]  }
  0x84   :  { %78 = dma.done.wait [#allocation3], 256  }
  0x85   :  { %79 = vsyncadd [#allocation3], 4294967040 }
  0x86   :  { %50 = vsyncpa [#allocation3], 1 }

</bundles_post_ra>
